<compile_context>
chip_gen: v7x
topology: tpu7x:2x2x1
jax: 0.10.0
libtpu: 0.0.40
codegen_flags: <defaults>
</compile_context>

<pallas_src>
import functools

import jax
import jax.numpy as jnp
from jax.experimental import pallas as pl
from jax.experimental.pallas import tpu as pltpu

# ---- hybrid-layer hyperparameters (kwargs of CustomHybridLayer) -------------
FREQ_COUNT = 3               # frequency_count for the Fourier branch
G_GRID_COUNT = 6             # g_grid_count for the Gaussian branch
G_GRID_RANGE = (-1.0, 1.0)   # g_grid_range
NUM_FEATS = 2 * FREQ_COUNT + G_GRID_COUNT + 1   # 13 feature blocks


def _round_up(n, m):
    return ((n + m - 1) // m) * m


def make_gaussian_grid():
    lo, hi = G_GRID_RANGE
    centers = jnp.linspace(lo, hi, G_GRID_COUNT)
    sigma = float((hi - lo) / (G_GRID_COUNT - 1))
    return tuple(float(c) for c in centers), sigma


def hybrid_kan_kernel(x_ref, w_ref, b_ref, o_ref, *, freq_count, g_centers,
                      inv_two_sig2):
    """One batch tile: [TB, I] -> [TB, Op] via a single fused MXU matmul.

    x_ref : VMEM f32[TB, I]
    w_ref : VMEM f32[NUM_FEATS * I, Op]   contributions already folded in
    b_ref : VMEM f32[1, Op]               c_lin * bias, already folded in
    o_ref : VMEM f32[TB, Op]
    """
    x = x_ref[...].astype(jnp.float32)                     # [TB, I]

    # ---- Fourier features via angle-addition recurrence (2 EUP ops total) ---
    c1 = jnp.cos(x)
    s1 = jnp.sin(x)
    cos_feats = [c1]
    sin_feats = [s1]
    ck, sk = c1, s1
    for _ in range(freq_count - 1):                        # static unroll
        ck_next = ck * c1 - sk * s1                        # cos((k+1)x)
        sk_next = sk * c1 + ck * s1                        # sin((k+1)x)
        cos_feats.append(ck_next)
        sin_feats.append(sk_next)
        ck, sk = ck_next, sk_next

    # ---- Gaussian (RBF) features (naive exp: numerically safe for any |x|) --
    gauss_feats = []
    for c in g_centers:                                    # static unroll
        d = x - c
        gauss_feats.append(jnp.exp(-(d * d) * inv_two_sig2))

    # ---- Fused feature tensor and single MXU matmul --------------------------
    # Order must match the wrapper's weight concatenation:
    #   [cos(1x)..cos(Fx), sin(1x)..sin(Fx), phi_0..phi_{G-1}, x]
    feats = jnp.concatenate(cos_feats + sin_feats + gauss_feats + [x], axis=-1)
    o_ref[...] = (jnp.dot(feats, w_ref[...],
                          preferred_element_type=jnp.float32)
                  + b_ref[...])


def custom_hybrid_layer(x, params):
    """x: f32[B, I]  ->  f32[B, output_size]."""
    B, I = x.shape
    O = params["w_lin"].shape[-1]
    c = params["contributions"]
    g_centers, g_sigma = make_gaussian_grid()
    inv_two_sig2 = 1.0 / (2.0 * g_sigma * g_sigma)

    # --- fold contributions into one concatenated [NUM_FEATS*I, O] weight ----
    w_all = jnp.concatenate(
        [c[0] * params["w_cos"].reshape(FREQ_COUNT * I, O),
         c[0] * params["w_sin"].reshape(FREQ_COUNT * I, O),
         c[1] * params["w_gauss"].reshape(G_GRID_COUNT * I, O),
         c[2] * params["w_lin"]],
        axis=0).astype(jnp.float32)
    b_all = (c[2] * params["b_lin"]).astype(jnp.float32)   # [1, O]

    # --- lane-dense output: pad O to a multiple of 128 -----------------------
    Op = _round_up(O, 128)
    if Op != O:
        w_all = jnp.pad(w_all, ((0, 0), (0, Op - O)))
        b_all = jnp.pad(b_all, ((0, 0), (0, Op - O)))

    # --- batch tiling ---------------------------------------------------------
    TB = min(512, _round_up(B, 8))
    Bp = _round_up(B, TB)
    xp = x if Bp == B else jnp.pad(x, ((0, Bp - B), (0, 0)))
    grid = (Bp // TB,)

    # --- VMEM budget: resident weights + double-buffered x/out tiles ---------
    footprint = (NUM_FEATS * I * Op * 4        # resident fused weights
                 + 2 * TB * I * 4              # x double buffer
                 + 2 * TB * Op * 4             # out double buffer
                 + TB * NUM_FEATS * I * 4      # in-kernel feature tile
                 + Op * 4)                     # bias
    vmem_limit = min(int(footprint * 1.5) + (4 << 20), 100 << 20)

    kernel = functools.partial(hybrid_kan_kernel,
                               freq_count=FREQ_COUNT,
                               g_centers=g_centers,
                               inv_two_sig2=inv_two_sig2)

    out_padded = pl.pallas_call(
        kernel,
        out_shape=jax.ShapeDtypeStruct((Bp, Op), jnp.float32),
        grid=grid,
        in_specs=[
            pl.BlockSpec((TB, I), lambda b: (b, 0)),                 # x tile
            pl.BlockSpec((NUM_FEATS * I, Op), lambda b: (0, 0)),     # weights
            pl.BlockSpec((1, Op), lambda b: (0, 0)),                 # bias
        ],
        out_specs=pl.BlockSpec((TB, Op), lambda b: (b, 0)),
        compiler_params=pltpu.CompilerParams(
            dimension_semantics=("parallel",),
            vmem_limit_bytes=vmem_limit),
    )(xp, w_all, b_all)

    return out_padded[:B, :O]


def reference_hybrid_layer(x, params):
    """Pure-JAX reference matching the original branch-by-branch forward()."""
    g_centers, g_sigma = make_gaussian_grid()
    c = params["contributions"]

    four = jnp.zeros((x.shape[0], params["w_lin"].shape[-1]), jnp.float32)
    for f in range(FREQ_COUNT):
        kx = (f + 1.0) * x
        four += jnp.cos(kx) @ params["w_cos"][f] + jnp.sin(kx) @ params["w_sin"][f]

    gauss = jnp.zeros_like(four)
    for j in range(G_GRID_COUNT):
        d = x - g_centers[j]
        gauss += jnp.exp(-(d * d) / (2.0 * g_sigma * g_sigma)) @ params["w_gauss"][j]

    lin = x @ params["w_lin"] + params["b_lin"]
    return c[0] * four + c[1] * gauss + c[2] * lin


def init_params(key, input_size, output_size):
    ks = jax.random.split(key, 5)
    bound = 1.0 / jnp.sqrt(input_size)  # nn.Linear-style uniform bound
    n_branches = 3
    return {
        # nn.Parameter(torch.full((bf_num,), 1.0 / bf_num))
        "contributions": jnp.full((n_branches,), 1.0 / n_branches, jnp.float32),
        "w_cos": 0.1 * jax.random.normal(
            ks[0], (FREQ_COUNT, input_size, output_size), jnp.float32),
        "w_sin": 0.1 * jax.random.normal(
            ks[1], (FREQ_COUNT, input_size, output_size), jnp.float32),
        "w_gauss": 0.1 * jax.random.normal(
            ks[2], (G_GRID_COUNT, input_size, output_size), jnp.float32),
        "w_lin": jax.random.uniform(
            ks[3], (input_size, output_size), jnp.float32, -bound, bound),
        "b_lin": jax.random.uniform(
            ks[4], (1, output_size), jnp.float32, -bound, bound),
    }


if __name__ == "__main__":
    batch, input_size, output_size = 8, 32, 16

    key = jax.random.PRNGKey(0)
    k_x, k_p = jax.random.split(key)
    x = jax.random.normal(k_x, (batch, input_size), jnp.float32)
    params = init_params(k_p, input_size, output_size)

    out = custom_hybrid_layer(x, params)
    out = jax.block_until_ready(out)

    ref = reference_hybrid_layer(x, params)
    assert out.shape == (batch, output_size), out.shape
    assert jnp.allclose(out, ref, atol=1e-4, rtol=1e-4), \
        f"max abs err {jnp.max(jnp.abs(out - ref))}"

    print("KERNEL_OK")
</pallas_src>

<mosaic_0001>
module attributes {stable_mosaic.version = 11 : i64} {
  func.func @hybrid_kan_kernel(%arg0: i32, %arg1: memref<8x32xf32, #tpu.memory_space<vmem>>, %arg2: memref<416x128xf32, #tpu.memory_space<vmem>>, %arg3: memref<1x128xf32, #tpu.memory_space<vmem>>, %arg4: memref<8x128xf32, #tpu.memory_space<vmem>>) attributes {dimension_semantics = [#tpu.dimension_semantics<parallel>], iteration_bounds = array<i64: 1>, scalar_prefetch = 0 : i64, scratch_operands = 0 : i64, tpu.core_type = #tpu.core_type<tc>, window_params = [{transform_indices = @transform_0, window_bounds = array<i64: 8, 32>}, {pipeline_mode = #tpu.pipeline_mode<synchronous>, transform_indices = @transform_1, window_bounds = array<i64: 416, 128>}, {pipeline_mode = #tpu.pipeline_mode<synchronous>, transform_indices = @transform_2, window_bounds = array<i64: 1, 128>}, {transform_indices = @transform_3, window_bounds = array<i64: 8, 128>}]} {
    %c0 = arith.constant 0 : index
    %c0_0 = arith.constant 0 : index
    %0 = vector.load %arg1[%c0, %c0_0] : memref<8x32xf32, #tpu.memory_space<vmem>>, vector<8x32xf32>
    %1 = math.cos %0 : vector<8x32xf32>
    %2 = math.sin %0 : vector<8x32xf32>
    %3 = arith.mulf %1, %1 : vector<8x32xf32>
    %4 = arith.mulf %2, %2 : vector<8x32xf32>
    %5 = arith.subf %3, %4 : vector<8x32xf32>
    %6 = arith.mulf %2, %1 : vector<8x32xf32>
    %7 = arith.mulf %1, %2 : vector<8x32xf32>
    %8 = arith.addf %6, %7 : vector<8x32xf32>
    %9 = arith.mulf %5, %1 : vector<8x32xf32>
    %10 = arith.mulf %8, %2 : vector<8x32xf32>
    %11 = arith.subf %9, %10 : vector<8x32xf32>
    %12 = arith.mulf %8, %1 : vector<8x32xf32>
    %13 = arith.mulf %5, %2 : vector<8x32xf32>
    %14 = arith.addf %12, %13 : vector<8x32xf32>
    %cst = arith.constant -1.000000e+00 : f32
    %15 = vector.broadcast %cst : f32 to vector<8x32xf32>
    %16 = arith.subf %0, %15 : vector<8x32xf32>
    %17 = arith.mulf %16, %16 : vector<8x32xf32>
    %cst_1 = arith.constant 0.000000e+00 : f32
    %18 = vector.broadcast %cst_1 : f32 to vector<8x32xf32>
    %19 = arith.subf %18, %17 : vector<8x32xf32>
    %cst_2 = arith.constant 3.125000e+00 : f32
    %20 = vector.broadcast %cst_2 : f32 to vector<8x32xf32>
    %21 = arith.mulf %19, %20 : vector<8x32xf32>
    %22 = math.exp %21 : vector<8x32xf32>
    %cst_3 = arith.constant -6.000000e-01 : f32
    %23 = vector.broadcast %cst_3 : f32 to vector<8x32xf32>
    %24 = arith.subf %0, %23 : vector<8x32xf32>
    %25 = arith.mulf %24, %24 : vector<8x32xf32>
    %cst_4 = arith.constant 0.000000e+00 : f32
    %26 = vector.broadcast %cst_4 : f32 to vector<8x32xf32>
    %27 = arith.subf %26, %25 : vector<8x32xf32>
    %cst_5 = arith.constant 3.125000e+00 : f32
    %28 = vector.broadcast %cst_5 : f32 to vector<8x32xf32>
    %29 = arith.mulf %27, %28 : vector<8x32xf32>
    %30 = math.exp %29 : vector<8x32xf32>
    %cst_6 = arith.constant -0.200000018 : f32
    %31 = vector.broadcast %cst_6 : f32 to vector<8x32xf32>
    %32 = arith.subf %0, %31 : vector<8x32xf32>
    %33 = arith.mulf %32, %32 : vector<8x32xf32>
    %cst_7 = arith.constant 0.000000e+00 : f32
    %34 = vector.broadcast %cst_7 : f32 to vector<8x32xf32>
    %35 = arith.subf %34, %33 : vector<8x32xf32>
    %cst_8 = arith.constant 3.125000e+00 : f32
    %36 = vector.broadcast %cst_8 : f32 to vector<8x32xf32>
    %37 = arith.mulf %35, %36 : vector<8x32xf32>
    %38 = math.exp %37 : vector<8x32xf32>
    %cst_9 = arith.constant 0.200000033 : f32
    %39 = vector.broadcast %cst_9 : f32 to vector<8x32xf32>
    %40 = arith.subf %0, %39 : vector<8x32xf32>
    %41 = arith.mulf %40, %40 : vector<8x32xf32>
    %cst_10 = arith.constant 0.000000e+00 : f32
    %42 = vector.broadcast %cst_10 : f32 to vector<8x32xf32>
    %43 = arith.subf %42, %41 : vector<8x32xf32>
    %cst_11 = arith.constant 3.125000e+00 : f32
    %44 = vector.broadcast %cst_11 : f32 to vector<8x32xf32>
    %45 = arith.mulf %43, %44 : vector<8x32xf32>
    %46 = math.exp %45 : vector<8x32xf32>
    %cst_12 = arith.constant 6.000000e-01 : f32
    %47 = vector.broadcast %cst_12 : f32 to vector<8x32xf32>
    %48 = arith.subf %0, %47 : vector<8x32xf32>
    %49 = arith.mulf %48, %48 : vector<8x32xf32>
    %cst_13 = arith.constant 0.000000e+00 : f32
    %50 = vector.broadcast %cst_13 : f32 to vector<8x32xf32>
    %51 = arith.subf %50, %49 : vector<8x32xf32>
    %cst_14 = arith.constant 3.125000e+00 : f32
    %52 = vector.broadcast %cst_14 : f32 to vector<8x32xf32>
    %53 = arith.mulf %51, %52 : vector<8x32xf32>
    %54 = math.exp %53 : vector<8x32xf32>
    %cst_15 = arith.constant 1.000000e+00 : f32
    %55 = vector.broadcast %cst_15 : f32 to vector<8x32xf32>
    %56 = arith.subf %0, %55 : vector<8x32xf32>
    %57 = arith.mulf %56, %56 : vector<8x32xf32>
    %cst_16 = arith.constant 0.000000e+00 : f32
    %58 = vector.broadcast %cst_16 : f32 to vector<8x32xf32>
    %59 = arith.subf %58, %57 : vector<8x32xf32>
    %cst_17 = arith.constant 3.125000e+00 : f32
    %60 = vector.broadcast %cst_17 : f32 to vector<8x32xf32>
    %61 = arith.mulf %59, %60 : vector<8x32xf32>
    %62 = math.exp %61 : vector<8x32xf32>
    %63 = tpu.concatenate %1, %5, %11, %2, %8, %14, %22, %30, %38, %46, %54, %62, %0 in 1 : vector<8x32xf32>, vector<8x32xf32>, vector<8x32xf32>, vector<8x32xf32>, vector<8x32xf32>, vector<8x32xf32>, vector<8x32xf32>, vector<8x32xf32>, vector<8x32xf32>, vector<8x32xf32>, vector<8x32xf32>, vector<8x32xf32>, vector<8x32xf32> -> vector<8x416xf32>
    %c0_18 = arith.constant 0 : index
    %c0_19 = arith.constant 0 : index
    %64 = vector.load %arg2[%c0_18, %c0_19] : memref<416x128xf32, #tpu.memory_space<vmem>>, vector<416x128xf32>
    %cst_20 = arith.constant dense<0.000000e+00> : vector<8x128xf32>
    %65 = tpu.matmul %63, %64, %cst_20 {dimension_numbers = #tpu.dot_dimension_numbers<[1], [0], [0], [1], [0, 0, 1, 1], [], []>} : vector<8x416xf32>, vector<416x128xf32>, vector<8x128xf32> -> vector<8x128xf32>
    %c0_21 = arith.constant 0 : index
    %c0_22 = arith.constant 0 : index
    %66 = vector.load %arg3[%c0_21, %c0_22] : memref<1x128xf32, #tpu.memory_space<vmem>>, vector<1x128xf32>
    %67 = vector.broadcast %66 : vector<1x128xf32> to vector<8x128xf32>
    %68 = arith.addf %65, %67 : vector<8x128xf32>
    %c0_23 = arith.constant 0 : index
    %c0_24 = arith.constant 0 : index
    %69 = vector.load %arg4[%c0_23, %c0_24] : memref<8x128xf32, #tpu.memory_space<vmem>>, vector<8x128xf32>
    tpu.vector_store %arg4[%c0_23, %c0_24], %68 {strides = array<i32>} : memref<8x128xf32, #tpu.memory_space<vmem>>, vector<8x128xf32>,
    return
  }
  func.func @transform_0(%arg0: i32) -> (i32, i32) {
    %c0_i32 = arith.constant 0 : i32
    %c0_i32_0 = arith.constant 0 : i32
    return %arg0, %c0_i32 : i32, i32
  }
  func.func @transform_1(%arg0: i32) -> (i32, i32) {
    %c0_i32 = arith.constant 0 : i32
    %c0_i32_0 = arith.constant 0 : i32
    %c0_i32_1 = arith.constant 0 : i32
    return %c0_i32, %c0_i32_0 : i32, i32
  }
  func.func @transform_2(%arg0: i32) -> (i32, i32) {
    %c0_i32 = arith.constant 0 : i32
    %c0_i32_0 = arith.constant 0 : i32
    %c0_i32_1 = arith.constant 0 : i32
    return %c0_i32, %c0_i32_0 : i32, i32
  }
  func.func @transform_3(%arg0: i32) -> (i32, i32) {
    %c0_i32 = arith.constant 0 : i32
    %c0_i32_0 = arith.constant 0 : i32
    return %arg0, %c0_i32 : i32, i32
  }
}

</mosaic_0001>

<bundles_post_ra>
// kernel: tpu_custom_call.1
= control target key start
LH: loop header
LB: loop body
LE: loop exit
PB: predicated region body
PF: predicated region fallthrough
CT: control target
= control target key end

     0   :  { %8 = vsyncpa [#allocation3], 0  ;;  %s950_s0 = inlined_call_operand.hbm [shape: f32[8,32], index: 0, kind: input, shape index: {}]   ;;  %s951_s1 = inlined_call_operand.hbm [shape: f32[416,128], index: 1, kind: input, shape index: {}]   ;;  %s952_s2 = inlined_call_operand.vmem [shape: f32[1,128], index: 2, kind: input, shape index: {}]   ;;  %s953_s3 = inlined_call_operand.hbm [shape: f32[8,128], index: 3, kind: output, shape index: {}]  }
   0x1   :  { %9 = vsyncpa [#allocation6], 0 }
   0x2   :  { %10 = vsyncpa [#allocation4], 0  ;;  %s798_s12 = smov [#allocation2]   ;;  %s799_s14 = smov [#allocation5]  }
   0x3   :  { %s17_s13 = sshll.u32 %s798_s12, 4  ;;  %s26_s15 = sshll.u32 %s799_s14, 4  ;;  %s18_s13 = int_to_ptr.vmem [resolvable:$true] %s17_s13  ;;  %s833_s15 = int_to_ptr.vmem [resolvable:$true] %s26_s15 }
   0x4   :  { %s726_s18 = scalar_lea.hbm %s950_s0, 128 }
   0x5   :  { %p727_p0 = scmp.ne.s32.totalorder %s950_s0, %s726_s18  ;;  %p730_p1 = scmp.lt.u32.totalorder %s726_s18, %s950_s0 }
   0x7   :  { %p732_p2 = pnand %p730_p1, %p727_p0 }
   0x9   :  { %735 = shalt.err (!%p732_p2)
}
   0xa   :  { %s736_s23 = scalar_lea.vmem %s18_s13, 128  ;;  %p741_p4 = scmp.lt.s32.totalorder %s18_s13, %s18_s13 }
   0xb   :  { %p737_p3 = scmp.ne.s32.totalorder %s18_s13, %s736_s23  ;;  %p742_p5 = scmp.lt.s32.totalorder %s736_s23, %s736_s23 }
   0xd   :  { %p743_p6 = por %p742_p5, %p741_p4 }
   0xf   :  { %p744_p7 = pnand %p743_p6, %p737_p3 }
  0x11   :  { %747 = shalt.err (!%p744_p7)
}
  0x12   :  { %20 = dma.hbm_to_vmem [thread:$0]  %s950_s0, 128, %s18_s13, [#allocation3]  }
  0x13   :  { %s748_s28 = scalar_lea.hbm %s951_s1, 6656 }
  0x14   :  { %p749_p8 = scmp.ne.s32.totalorder %s951_s1, %s748_s28  ;;  %p752_p9 = scmp.lt.u32.totalorder %s748_s28, %s951_s1 }
  0x16   :  { %p754_p10 = pnand %p752_p9, %p749_p8 }
  0x18   :  { %757 = shalt.err (!%p754_p10)
}
  0x19   :  { %s758_s6 = scalar_lea.vmem %s833_s15, 6656  ;;  %p763_p12 = scmp.lt.s32.totalorder %s833_s15, %s833_s15 }
  0x1a   :  { %p759_p11 = scmp.ne.s32.totalorder %s833_s15, %s758_s6  ;;  %p764_p13 = scmp.lt.s32.totalorder %s758_s6, %s758_s6 }
  0x1c   :  { %p765_p0 = por %p764_p13, %p763_p12 }
  0x1e   :  { %p766_p1 = pnand %p765_p0, %p759_p11 }
  0x20   :  { %769 = shalt.err (!%p766_p1)
}
  0x21   :  { %s800_s0 = smov 128   ;;  %s801_s7 = smov 8  }
  0x22   :  { %32 = dma.hbm_to_vmem [thread:$0]  %s951_s1, 6656, %s833_s15, [#allocation6], %s800_s0, %s800_s0, %s801_s7  }
  0x23   :  { %792 = dma.done.wait [#allocation3], 128  }
  0x24   :  { %793 = vsyncadd [#allocation3], 4294967168 }
  0x25   :  { %794 = dma.done.wait [#allocation6], 6656  }
  0x26   :  { %795 = vsyncadd [#allocation6], 4294960640  ;;  %v802_v0 = vmov 0.0|0.0   ;;  %v865_v1 = vld [vmem:[#allocation2] sm:$0xff]  ;;  %v376_v2 = vld [vmem:[#allocation5 + $0x100] sm:$0xff]  ;;  %s809_s1 = smov 96  }
  0x27   :  { %646 = vmatprep.subr.bf16.mxu1 %v802_v0  ;;  %v377_v3 = vld [vmem:[#allocation5 + $0x108] sm:$0xff]  ;;  %v45_v4 = vand.u32 2139095040, %v865_v1  ;;  %v42_v5 = vand.u32 2147483647, %v865_v1  ;;  %v378_v6 = vld [vmem:[#allocation5 + $0x110] sm:$0xff]  ;;  %v379_v7 = vld [vmem:[#allocation5 + $0x118] sm:$0xff]  ;;  %vm134_vm9 = vweird.f32 %v865_v1 }
  0x28   :  { %v647_v9 = vpack.c.bf16 %v377_v3, %v376_v2  ;;  %v360_v10 = vld [vmem:[#allocation5 + $0x80] sm:$0xff]  ;;  %v361_v11 = vld [vmem:[#allocation5 + $0x88] sm:$0xff]  ;;  %v650_v13 = vpack.c.bf16 %v379_v7, %v378_v6  ;;  %v362_v21 = vld [vmem:[#allocation5 + $0x90] sm:$0xff]  ;;  %v803_v34 = vmov 683565275   ;;  %vm44_vm7 = vcmp.lt.s32.totalorder %v865_v1, 0 }
  0x29   :  { %v46_v8 = vshrl.u32 %v45_v4, 23  ;;  %v344_v14 = vld [vmem:[#allocation5] sm:$0xff]  ;;  %v49_v15 = vand.u32 8388607, %v42_v5  ;;  %v345_v16 = vld [vmem:[#allocation5 + $0x8] sm:$0xff]  ;;  %v614_v20 = vpack.c.bf16 %v361_v11, %v360_v10  ;;  %v363_v24 = vld [vmem:[#allocation5 + $0x98] sm:$0xff] }
  0x2a   :  { %648 = vmatpush1.bf16.msra.mxu1 %v647_v9  ;;  %v380_v17 = vld [vmem:[#allocation5 + $0x120] sm:$0xff]  ;;  %v381_v18 = vld [vmem:[#allocation5 + $0x128] sm:$0xff]  ;;  %v616_v22 = vpack.c.bf16 %v345_v16, %v344_v14  ;;  %v346_v25 = vld [vmem:[#allocation5 + $0x10] sm:$0xff]  ;;  %v618_v31 = vpack.c.bf16 %v363_v24, %v362_v21  ;;  %v804_v36 = vmov 2475754826   ;;  %s810_s10 = smov 32  }
  0x2b   :  { %v563_v12 = vadd.s32 4294967169, %v46_v8  ;;  %649 = vmatprep.subr.bf16.mxu1 %v802_v0  ;;  %615 = vmatprep.subr.bf16.mxu0 %v614_v20  ;;  %v653_v23 = vpack.c.bf16 %v381_v18, %v380_v17  ;;  %v347_v26 = vld [vmem:[#allocation5 + $0x18] sm:$0xff]  ;;  %v50_v27 = vor.u32 8388608, %v49_v15  ;;  %v805_v38 = vmov 2131351028   ;;  %v382_v49 = vld [vmem:[#allocation5 + $0x130] sm:$0xff] }
  0x2c   :  { %617 = vmatpush3.bf16.msra.mxu0 %v616_v22  ;;  %v620_v32 = vpack.c.bf16 %v347_v26, %v346_v25  ;;  %v806_v40 = vmov 2102212464   ;;  %v807_v42 = vmov 920167782   ;;  %v383_v50 = vld [vmem:[#allocation5 + $0x138] sm:$0xff]  ;;  %v364_v2 = vld [vmem:[#allocation5 + $0xa0] sm:$0xff] }
  0x2d   :  { %v52_v19 = vadd.s32 1, %v563_v12  ;;  %v873_v44 = vshll.u32 %v50_v27, 8  ;;  %619 = vmatprep.subr.bf16.mxu0 %v618_v31  ;;  %v808_v52 = vmov 1326507024   ;;  %v656_v59 = vpack.c.bf16 %v383_v50, %v382_v49  ;;  %v365_v3 = vld [vmem:[#allocation5 + $0xa8] sm:$0xff]  ;;  %v348_v4 = vld [vmem:[#allocation5 + $0x20] sm:$0xff] }
  0x2e   :  { %651 = vmatpush1.bf16.msra.mxu1 %v650_v13  ;;  %v349_v9 = vld [vmem:[#allocation5 + $0x28] sm:$0xff]  ;;  %v384_v10 = vld [vmem:[#allocation5 + $0x140] sm:$0xff]  ;;  %v366_v14 = vld [vmem:[#allocation5 + $0xb0] sm:$0xff]  ;;  %vm43_vm8 = vcmp.le.f32.partialorder %v42_v5, 0.7853982  ;;  %s811_s11 = smov 64  }
  0x2f   :  { %vm53_vm0 = vcmp.gt.s32.totalorder %v52_v19, 0  ;;  %652 = vmatprep.subr.bf16.mxu1 %v802_v0  ;;  %v385_v13 = vld [vmem:[#allocation5 + $0x148] sm:$0xff]  ;;  %v367_v15 = vld [vmem:[#allocation5 + $0xb8] sm:$0xff]  ;;  %v350_v20 = vld [vmem:[#allocation5 + $0x30] sm:$0xff]  ;;  %s812_s14 = smov [#allocation7]  }
  0x30   :  { %v54_v28 = vsel %vm53_vm0, %v52_v19, 0  ;;  %621 = vmatpush3.bf16.msra.mxu0 %v620_v32  ;;  %v622_v19 = vpack.c.bf16 %v365_v3, %v364_v2  ;;  %v351_v25 = vld [vmem:[#allocation5 + $0x38] sm:$0xff]  ;;  %v386_v26 = vld [vmem:[#allocation5 + $0x150] sm:$0xff]  ;;  %v626_v31 = vpack.c.bf16 %v367_v15, %v366_v14  ;;  %v368_v32 = vld [vmem:[#allocation5 + $0xc0] sm:$0xff]  ;;  %v572_v3 = vadd.f32 0.6, %v865_v1 }
  0x31   :  { %v56_v29 = vand.u32 31, %v54_v28  ;;  %v55_v30 = vshrl.u32 %v54_v28, 5  ;;  %v387_v27 = vld [vmem:[#allocation5 + $0x158] sm:$0xff]  ;;  %v624_v28 = vpack.c.bf16 %v349_v9, %v348_v4  ;;  %v354_v49 = vld [vmem:[#allocation5 + $0x50] sm:$0xff]  ;;  %vm332_vm0 = vcmask 261120   ;;  %s553_s15 = sshll.u32 %s812_s14, 4  ;;  %s554_s15 = int_to_ptr.vmem [resolvable:$true] %s553_s15 }
  0x32   :  { %654 = vmatpush1.bf16.msra.mxu1 %v653_v23  ;;  %623 = vmatprep.subr.bf16.mxu0 %v622_v19  ;;  %v355_v50 = vld [vmem:[#allocation5 + $0x58] sm:$0xff]  ;;  %v267_v9 = vmul.f32 %v572_v3, %v572_v3  ;;  %v576_v19 = vadd.f32 -1.0, %v865_v1  ;;  %v393_v3 = vld [vmem:[#allocation5 + $0x188] sm:$0xff]  ;;  %s770_s16 = scalar_lea.vmem %s554_s15, 128  ;;  %p775_p3 = scmp.lt.s32.totalorder %s554_s15, %s554_s15 }
  0x33   :  { %v57_v33 = vsub.s32 32, %v56_v29  ;;  %v59_v35 = vshll.u32 %v803_v34, %v56_v29  ;;  %v62_v37 = vshll.u32 %v804_v36, %v56_v29  ;;  %v65_v39 = vshll.u32 %v805_v38, %v56_v29  ;;  %655 = vmatprep.subr.bf16.mxu1 %v802_v0  ;;  %578 = vmatprep.mubr.msk.f32.mxu1 %vm332_vm0, %v865_v1  ;;  %p771_p2 = scmp.ne.s32.totalorder %s554_s15, %s770_s16  ;;  %p776_p4 = scmp.lt.s32.totalorder %s770_s16, %s770_s16 }
  0x34   :  { %v68_v41 = vshll.u32 %v806_v40, %v56_v29  ;;  %v71_v43 = vshll.u32 %v807_v42, %v56_v29  ;;  %vm74_vm1 = vcmp.lt.s32.totalorder %v55_v30, 1  ;;  %vm75_vm2 = vcmp.lt.s32.totalorder %v55_v30, 2  ;;  %625 = vmatpush3.bf16.msra.mxu0 %v624_v28 }
  0x35   :  { %v58_v45 = vshrl.u32 %v803_v34, %v57_v33  ;;  %v60_v46 = vshrl.u32 %v804_v36, %v57_v33  ;;  %v63_v47 = vshrl.u32 %v805_v38, %v57_v33  ;;  %v66_v48 = vshrl.u32 %v806_v40, %v57_v33  ;;  %v352_v36 = vld [vmem:[#allocation5 + $0x40] sm:$0xff]  ;;  %627 = vmatprep.subr.bf16.mxu0 %v626_v31  ;;  %p777_p5 = por %p776_p4, %p775_p3 }
  0x36   :  { %v69_v51 = vshrl.u32 %v807_v42, %v57_v33  ;;  %v72_v53 = vshrl.u32 %v808_v52, %v57_v33  ;;  %vm77_vm3 = vcmp.lt.s32.totalorder %v55_v30, 4  ;;  %vm76_vm4 = vcmp.lt.s32.totalorder %v55_v30, 3  ;;  %657 = vmatpush1.bf16.msra.mxu1 %v656_v59  ;;  %v369_v30 = vld [vmem:[#allocation5 + $0xc8] sm:$0xff]  ;;  %v388_v40 = vld [vmem:[#allocation5 + $0x160] sm:$0xff]  ;;  %v370_v42 = vld [vmem:[#allocation5 + $0xd0] sm:$0xff] }
  0x37   :  { %v61_v54 = vor.u32 %v60_v46, %v59_v35  ;;  %v64_v55 = vor.u32 %v63_v47, %v62_v37  ;;  %v67_v56 = vor.u32 %v66_v48, %v65_v39  ;;  %658 = vmatprep.subr.bf16.mxu1 %v802_v0  ;;  %v659_v29 = vpack.c.bf16 %v385_v13, %v384_v10  ;;  %v353_v39 = vld [vmem:[#allocation5 + $0x48] sm:$0xff]  ;;  %p778_p6 = pnand %p777_p5, %p771_p2 }
  0x38   :  { %v70_v57 = vor.u32 %v69_v51, %v68_v41  ;;  %v73_v58 = vor.u32 %v72_v53, %v71_v43  ;;  %v628_v34 = vpack.c.bf16 %v351_v25, %v350_v20  ;;  %v662_v35 = vpack.c.bf16 %v387_v27, %v386_v26  ;;  %v389_v41 = vld [vmem:[#allocation5 + $0x168] sm:$0xff]  ;;  %v371_v43 = vld [vmem:[#allocation5 + $0xd8] sm:$0xff] }
  0x39   :  { %v78_v60 = vsel %vm74_vm1, %v58_v45, %v61_v54  ;;  %v79_v61 = vsel %vm77_vm3, %v67_v56, 2102212464  ;;  %v82_v62 = vsel %vm74_vm1, %v61_v54, %v64_v55  ;;  %v86_v63 = vsel %vm74_vm1, %v64_v55, %v67_v56 }
  0x3a   :  { %v80_v6 = vsel %vm76_vm4, %v64_v55, %v79_v61  ;;  %v83_v7 = vsel %vm77_vm3, %v70_v57, 920167782  ;;  %v87_v8 = vsel %vm77_vm3, %v73_v58, 1326507024  ;;  %660 = vmatpush1.bf16.msra.mxu1 %v659_v29  ;;  %v630_v38 = vpack.c.bf16 %v369_v30, %v368_v32  ;;  %629 = vmatpush3.bf16.msra.mxu0 %v628_v34 }
  0x3b   :  { %v84_v11 = vsel %vm76_vm4, %v67_v56, %v83_v7  ;;  %v88_v12 = vsel %vm76_vm4, %v70_v57, %v87_v8  ;;  %v81_v16 = vsel %vm75_vm2, %v78_v60, %v80_v6  ;;  %661 = vmatprep.subr.bf16.mxu1 %v802_v0  ;;  %v632_v46 = vpack.c.bf16 %v353_v39, %v352_v36 }
  0x3c   :  { %v85_v17 = vsel %vm75_vm2, %v82_v62, %v84_v11  ;;  %v89_v18 = vsel %vm75_vm2, %v86_v63, %v88_v12  ;;  %v97_v33 = vmul.u32 %v873_v44, %v81_v16  ;;  %v665_v47 = vpack.c.bf16 %v389_v41, %v388_v40  ;;  %631 = vmatprep.subr.bf16.mxu0 %v630_v38 }
  0x3d   :  { %v884_v21 = vmul.u32.u64.low %v873_v44, %v89_v18  ;;  %v885_v22 = vmul.u32.u64.high %v873_v44, %v89_v18, %v884_v21  ;;  %v888_v23 = vmul.u32.u64.low %v873_v44, %v85_v17  ;;  %v889_v24 = vmul.u32.u64.high %v873_v44, %v85_v17, %v888_v23 }
  0x3e   :  { %663 = vmatpush1.bf16.msra.mxu1 %v662_v35  ;;  %v634_v48 = vpack.c.bf16 %v371_v43, %v370_v42  ;;  %633 = vmatpush3.bf16.msra.mxu0 %v632_v46  ;;  %v636_v53 = vpack.c.bf16 %v355_v50, %v354_v49  ;;  %v574_v12 = vadd.f32 -0.20000003, %v865_v1  ;;  %v268_v15 = vsub.f32 0.0, %v267_v9  ;;  %v375_v9 = vld [vmem:[#allocation5 + $0xf8] sm:$0xff] }
  0x3f   :  { %vm99_vm5 = vc.u32 %v885_v22, %v888_v23  ;;  %v100_v37 = vadd.s32 1, %v889_v24  ;;  %664 = vmatprep.subr.bf16.mxu1 %v802_v0  ;;  %v98_v60 = vadd.s32 %v888_v23, %v885_v22  ;;  %v571_v16 = vadd.f32 1.0, %v865_v1 }
  0x40   :  { %635 = vmatprep.subr.bf16.mxu0 %v634_v48  ;;  %v279_v18 = vmul.f32 %v574_v12, %v574_v12  ;;  %v269_v22 = vmul.f32 3.125, %v268_v15  ;;  %v291_v26 = vmul.f32 %v576_v19, %v576_v19  ;;  %v575_v29 = vadd.f32 -0.6, %v865_v1  ;;  %v391_v48 = vld [vmem:[#allocation5 + $0x178] sm:$0xff]  ;;  %v394_v19 = vld [vmem:[#allocation5 + $0x190] sm:$0xff] }
  0x41   :  { %v101_v44 = vsel %vm99_vm5, %v100_v37, %v889_v24  ;;  %v261_v23 = vmul.f32 %v571_v16, %v571_v16  ;;  %v359_v15 = vld [vmem:[#allocation5 + $0x78] sm:$0xff]  ;;  %vm334_vm1 = vcmask 523264   ;;  %vm336_vm2 = vcmask 785408  }
  0x42   :  { %v102_v45 = vadd.s32 %v101_v44, %v97_v33  ;;  %666 = vmatpush1.bf16.msra.mxu1 %v665_v47  ;;  %637 = vmatpush3.bf16.msra.mxu0 %v636_v53  ;;  %v280_v25 = vsub.f32 0.0, %v279_v18  ;;  %v270_v31 = vmul.f32 1.442695, %v269_v22  ;;  %v292_v34 = vsub.f32 0.0, %v291_v26  ;;  %v390_v47 = vld [vmem:[#allocation5 + $0x170] sm:$0xff] }
  0x43   :  { %667 = vmatprep.subr.bf16.mxu1 %v802_v0  ;;  %v262_v32 = vsub.f32 0.0, %v261_v23  ;;  %v285_v5 = vmul.f32 %v575_v29, %v575_v29  ;;  %v668_v50 = vpack.c.bf16 %v391_v48, %v390_v47 }
  0x44   :  { %v103_v51 = vadd.s32 536870912, %v102_v45  ;;  %v281_v33 = vmul.f32 3.125, %v280_v25  ;;  %v293_v39 = vmul.f32 3.125, %v292_v34 }
  0x45   :  { %v263_v35 = vmul.f32 3.125, %v262_v32  ;;  %v286_v40 = vsub.f32 0.0, %v285_v5  ;;  %v573_v5 = vadd.f32 0.20000002, %v865_v1 }
  0x46   :  { %v104_v52 = vshrl.u32 %v103_v51, 30  ;;  %v282_v38 = vmul.f32 1.442695, %v281_v33  ;;  %v294_v43 = vmul.f32 1.442695, %v293_v39  ;;  %v372_v51 = vld [vmem:[#allocation5 + $0xe0] sm:$0xff]  ;;  %669 = vmatpush1.bf16.msra.mxu1 %v668_v50 }
  0x47   :  { %v264_v41 = vmul.f32 1.442695, %v263_v35  ;;  %v287_v46 = vmul.f32 3.125, %v286_v40  ;;  %670 = vmatprep.subr.bf16.mxu1 %v802_v0  ;;  %v273_v35 = vmul.f32 %v573_v5, %v573_v5 }
  0x48   :  { %v105_v54 = vshll.u32 %v104_v52, 30  ;;  %v128_v14 = vsub.s32 4, %v104_v52 }
  0x49   :  { %v288_v16 = vmul.f32 1.442695, %v287_v46 }
  0x4a   :  { %v106_v55 = vsub.s32 %v102_v45, %v105_v54  ;;  %v129_v21 = vsel %vm44_vm7, %v128_v14, %v104_v52  ;;  %v373_v52 = vld [vmem:[#allocation5 + $0xe8] sm:$0xff]  ;;  %v358_v14 = vld [vmem:[#allocation5 + $0x70] sm:$0xff] }
  0x4b   :  { %v131_v28 = vsel %vm43_vm8, 0, %v129_v21  ;;  %v644_v18 = vpack.c.bf16 %v359_v15, %v358_v14 }
  0x4c   :  { %v108_v56 = vsub.s32 0, %v106_v55  ;;  %v238_v30 = vadd.s32 3, %v131_v28  ;;  %v135_v36 = vand.u32 3, %v131_v28 }
  0x4e   :  { %v564_v57 = vmin.u32 %v108_v56, %v106_v55  ;;  %v239_v37 = vand.u32 3, %v238_v30  ;;  %vm140_vm10 = vcmp.eq.s32.totalorder %v135_v36, 2  ;;  %vm137_vm12 = vcmp.eq.s32.totalorder %v135_v36, 0  ;;  %v356_v56 = vld [vmem:[#allocation5 + $0x60] sm:$0xff] }
  0x4f   :  { %vm136_vm14 = vcmp.lt.s32.totalorder %v135_v36, 2  ;;  %v274_v36 = vsub.f32 0.0, %v273_v35 }
  0x50   :  { %v110_v58 = vclz %v564_v57  ;;  %vm244_vm11 = vcmp.eq.s32.totalorder %v239_v37, 2  ;;  %vm241_vm13 = vcmp.eq.s32.totalorder %v239_v37, 0  ;;  %vm240_vm15 = vcmp.lt.s32.totalorder %v239_v37, 2  ;;  %v357_v57 = vld [vmem:[#allocation5 + $0x68] sm:$0xff] }
  0x51   :  { %v275_v37 = vmul.f32 3.125, %v274_v36 }
  0x52   :  { %v565_v59 = vadd.s32 4294967294, %v110_v58 }
  0x54   :  { %vm566_vm6 = vcmp.lt.s32.totalorder %v565_v59, 0 }
  0x55   :  { %v113_v61 = vsel %vm566_vm6, 0, %v565_v59 }
  0x56   :  { %v114_v62 = vsub.s32 32, %v113_v61  ;;  %v115_v63 = vshll.u32 %v106_v55, %v113_v61  ;;  %v118_v2 = vsub.s32 4294967266, %v113_v61  ;;  %v638_v55 = vpack.c.bf16 %v373_v52, %v372_v51 }
  0x57   :  { %v640_v61 = vpack.c.bf16 %v357_v57, %v356_v56 }
  0x58   :  { %v116_v4 = vshrl.u32 %v98_v60, %v114_v62  ;;  %v119_v6 = vadd.s32 127, %v118_v2  ;;  %639 = vmatprep.subr.bf16.mxu0 %v638_v55  ;;  %v392_v2 = vld [vmem:[#allocation5 + $0x180] sm:$0xff] }
  0x59   :  { %641 = vmatpush3.bf16.msra.mxu0 %v640_v61 }
  0x5a   :  { %v117_v7 = vor.u32 %v116_v4, %v115_v63  ;;  %v120_v8 = vshll.u32 %v119_v6, 23 }
  0x5c   :  { %v121_v10 = vor.u32 4788187, %v120_v8  ;;  %v124_v11 = vcvt.s32.f32 %v117_v7  ;;  %v671_v7 = vpack.c.bf16 %v393_v3, %v392_v2  ;;  %v374_v8 = vld [vmem:[#allocation5 + $0xf0] sm:$0xff] }
  0x5e   :  { %v122_v13 = vand.u32 2147483647, %v121_v10  ;;  %672 = vmatpush1.bf16.msra.mxu1 %v671_v7 }
  0x5f   :  { %673 = vmatprep.subr.bf16.mxu1 %v802_v0 }
  0x60   :  { %v125_v17 = vmul.f32 %v124_v11, %v122_v13 }
  0x62   :  { %v126_v20 = vxor.u32 2147483648, %v125_v17 }
  0x64   :  { %v127_v24 = vsel %vm44_vm7, %v126_v20, %v125_v17  ;;  %v642_v17 = vpack.c.bf16 %v375_v9, %v374_v8  ;;  %v395_v20 = vld [vmem:[#allocation5 + $0x198] sm:$0xff] }
  0x65   :  { %v130_v27 = vsel %vm43_vm8, %v865_v1, %v127_v24  ;;  %v674_v23 = vpack.c.bf16 %v395_v20, %v394_v19 }
  0x66   :  { %710 = vcosq.f32 %v130_v27  ;;  %643 = vmatprep.subr.bf16.mxu0 %v642_v17 }
  0x67   :  { %712 = vsinq.f32 %v130_v27  ;;  %645 = vmatpush3.bf16.msra.mxu0 %v644_v18  ;;  %675 = vmatpush1.bf16.msra.mxu1 %v674_v23 }
  0x68   :  { %714 = vpow2.f32 %v270_v31 }
  0x69   :  { %716 = vpow2.f32 %v282_v38  ;;  %v276_v38 = vmul.f32 1.442695, %v275_v37 }
  0x6a   :  { %718 = vpow2.f32 %v264_v41 }
  0x6b   :  { %720 = vpow2.f32 %v294_v43 }
  0x6c   :  { %722 = vpow2.f32 %v288_v16 }
  0x6d   :  { %724 = vpow2.f32 %v276_v38 }
  0x70   :  { %v711_v42 = vpop.eup %710 }
  0x71   :  { %v713_v44 = vpop.eup %712  ;;  %v141_v45 = vxor.u32 2147483648, %v711_v42 }
  0x72   :  { %v138_v49 = vxor.u32 2147483648, %v713_v44  ;;  %v715_v58 = vpop.eup %714 }
  0x73   :  { %v142_v53 = vsel %vm140_vm10, %v141_v45, %v713_v44  ;;  %v246_v54 = vsel %vm244_vm11, %v141_v45, %v713_v44  ;;  %v717_v24 = vpop.eup %716 }
  0x74   :  { %v139_v59 = vsel %vm137_vm12, %v711_v42, %v138_v49  ;;  %v243_v60 = vsel %vm241_vm13, %v711_v42, %v138_v49  ;;  %v719_v29 = vpop.eup %718 }
  0x75   :  { %v143_v62 = vsel %vm136_vm14, %v139_v59, %v142_v53  ;;  %v247_v63 = vsel %vm240_vm15, %v243_v60, %v246_v54  ;;  %v721_v30 = vpop.eup %720 }
  0x76   :  { %v918_v4 = vsel %vm134_vm9, nan, %v143_v62  ;;  %v248_v6 = vsel %vm134_vm9, nan, %v247_v63  ;;  %v723_v34 = vpop.eup %722  ;;  %v577_v62 = vld [vmem:[%s952_s2] ss:$0 sm:$0xff] }
  0x77   :  { %v249_v10 = vmul.f32 %v918_v4, %v918_v4  ;;  %v250_v11 = vmul.f32 %v248_v6, %v248_v6  ;;  %v252_v12 = vmul.f32 %v248_v6, %v918_v4  ;;  %v705_v13 = vpack.i.bf16 %v248_v6, %v715_v58  ;;  %v725_v44 = vpop.eup %724 }
  0x79   :  { %v251_v21 = vsub.f32 %v249_v10, %v250_v11  ;;  %v253_v22 = vadd.f32 %v252_v12, %v252_v12  ;;  %706 = vrot.lane.b32.xlu1 %v705_v13, %s809_s1 }
  0x7b   :  { %v257_v25 = vmul.f32 %v253_v22, %v918_v4  ;;  %v258_v26 = vmul.f32 %v251_v21, %v248_v6  ;;  %v254_v27 = vmul.f32 %v251_v21, %v918_v4  ;;  %v255_v28 = vmul.f32 %v253_v22, %v248_v6 }
  0x7d   :  { %v259_v31 = vadd.f32 %v258_v26, %v257_v25  ;;  %v256_v32 = vsub.f32 %v254_v27, %v255_v28  ;;  %321 = vrot.lane.b32.xlu1 %v717_v24, %s810_s10 }
  0x7f   :  { %v695_v33 = vpack.i.bf16 %v251_v21, %v259_v31  ;;  %v700_v0 = vpack.i.bf16 %v256_v32, %v719_v29 }
  0x81   :  { %696 = vrot.lane.b32.xlu0 %v695_v33, %s810_s10  ;;  %329 = vrot.lane.b32.xlu1 %v721_v30, %s809_s1 }
  0x85   :  { %701 = vrot.lane.b32.xlu0 %v700_v0, %s811_s11 }
  0x89   :  { %325 = vrot.lane.b32.xlu0 %v723_v34, %s811_s11 }
  0xeb   :  { %v707_v39 = vpop.permute.xlu1 %706 }
  0xec   :  { %v709_v45 = vunpack.i.h.bf16 %v707_v39  ;;  %v708_v46 = vunpack.i.l.bf16 %v707_v39 }
  0xef   :  { %v322_v41 = vpop.permute.xlu1 %321 }
  0xf0   :  { %v341_v1 = vsel %vm332_vm0, %v725_v44, %v322_v41 }
  0xf3   :  { %v697_v40 = vpop.permute.xlu0 %696  ;;  %v330_v53 = vpop.permute.xlu1 %329 }
  0xf4   :  { %v699_v42 = vunpack.i.h.bf16 %v697_v40  ;;  %v698_v43 = vunpack.i.l.bf16 %v697_v40 }
  0xf6   :  { %v338_v50 = vsel %vm332_vm0, %v253_v22, %v698_v43  ;;  %v333_v51 = vsel %vm332_vm0, %v918_v4, %v699_v42 }
  0xf7   :  { %v702_v47 = vpop.permute.xlu0 %701 }
  0xf8   :  { %v704_v48 = vunpack.i.h.bf16 %v702_v47  ;;  %v703_v49 = vunpack.i.l.bf16 %v702_v47 }
  0xfa   :  { %v339_v52 = vsel %vm334_vm1, %v338_v50, %v703_v49  ;;  %v335_v54 = vsel %vm334_vm1, %v333_v51, %v704_v48 }
  0xfb   :  { %v326_v55 = vpop.permute.xlu0 %325  ;;  %v340_v56 = vsel %vm336_vm2, %v339_v52, %v708_v46  ;;  %v337_v57 = vsel %vm336_vm2, %v335_v54, %v709_v45 }
  0xfc   :  { %v342_v58 = vsel %vm334_vm1, %v341_v1, %v326_v55  ;;  %470 = vmatprep.mubr.f32.mxu0 %v340_v56 }
  0xfd   :  { %471 = vmatmul.mubr.f32.vlgmr.msra.gmra.mrb[0].mxu0 %v337_v57  ;;  %v343_v59 = vsel %vm336_vm2, %v342_v58, %v330_v53 }
  0xfe   :  { %541 = vmatmul.mubr.f32.vlgmr.msra.gmra.mrb[0].mxu1 %v343_v59 }
 0x1d0   :  { %v611_v60 = vpop.f32.mrb[0].mxu0 }
 0x1d1   :  { %v612_v61 = vpop.f32.mrb[1].mxu0  ;;  %v542_v63 = vpop.f32.mrb[0].mxu1 }
 0x1d2   :  { %v613_v2 = vadd.f32 %v612_v61, %v611_v60  ;;  %v544_v3 = vpop.f32.mrb[1].mxu1 }
 0x1d4   :  { %v473_v4 = vadd.f32 %v613_v2, %v577_v62 }
 0x1d6   :  { %v543_v6 = vadd.f32 %v542_v63, %v473_v4 }
 0x1d8   :  { %546 = vst [vmem:[#allocation7] sm:$0xff] %v543_v6 }
 0x1d9   :  { %781 = shalt.err (!%p778_p6)
}
 0x1da   :  { %s782_s2 = scalar_lea.hbm %s953_s3, 128 }
 0x1db   :  { %p783_p7 = scmp.ne.s32.totalorder %s953_s3, %s782_s2  ;;  %p786_p8 = scmp.lt.u32.totalorder %s782_s2, %s953_s3 }
 0x1dd   :  { %p788_p9 = pnand %p786_p8, %p783_p7 }
 0x1df   :  { %791 = shalt.err (!%p788_p9)
}
 0x1e0   :  { %556 = dma.vmem_to_hbm [thread:$0]  %s554_s15, 128, %s953_s3, [#allocation4]  }
 0x1e1   :  { %796 = dma.done.wait [#allocation4], 128  }
 0x1e2   :  { %797 = vsyncadd [#allocation4], 4294967168 }
 0x1e3   :  { %560 = vsyncpa [#allocation3], 1 }
 0x1e4   :  { %561 = vsyncpa [#allocation6], 1 }
 0x1e5   :  { %562 = vsyncpa [#allocation4], 1 }

</bundles_post_ra>
